<compile_context>
chip_gen: v7x
topology: tpu7x:2x2x1
jax: 0.10.0
libtpu: 0.0.40
codegen_flags: <defaults>
</compile_context>

<pallas_src>
import jax
import jax.numpy as jnp
from jax import lax
from jax.experimental import pallas as pl
from jax.experimental.pallas import tpu as pltpu

_IN_LANES = 256   # 128 batch elements * 2 interleaved features per slab row
_OUT_LANES = 128  # 128 batch outputs per slab row


def _linear_2to1_kernel(x_ref, w_ref, b_ref, o_ref):
    """One lane/sublane-dense tile of interleaved Linear(2, 1).

    x_ref: (tr, 256) f32 VMEM  lanes = [b0f0, b0f1, b1f0, b1f1, ...] (row-major x)
    w_ref: (256, 128) f32 VMEM  kron(I_128, [w0; w1]) de-interleaving weight
    b_ref: (1,)      f32 SMEM  bias scalar
    o_ref: (tr, 128) f32 VMEM  batch-ordered outputs
    """
    acc = jnp.dot(
        x_ref[...],
        w_ref[...],
        preferred_element_type=jnp.float32,
        precision=lax.Precision.HIGHEST,   # exact-f32 accumulation on the MXU
    )
    o_ref[...] = (acc + b_ref[0]).astype(o_ref.dtype)


def _round_up(n, m):
    return ((n + m - 1) // m) * m


def _pick_row_tile(num_rows, max_rows):
    """Sublane tile: multiple of 8, >=2 grid steps when possible, <= max_rows."""
    if num_rows <= 16:
        return num_rows
    tile = min(max_rows, _round_up(pl.cdiv(num_rows, 2), 8))
    return min(tile, num_rows)


def rede_de_soma(x, weight, bias, *, row_tile=2048, min_pallas_batch=1024):
    """y = x @ weight.T + bias   (RedeDeSoma / torch.nn.Linear(2, 1) forward).

    x:      (B, 2)  float32
    weight: (1, 2)  float32  (PyTorch layout: (out_features, in_features))
    bias:   (1,)    float32
    returns (B, 1)  float32
    """
    B, IN = x.shape
    OUT, IN_w = weight.shape
    assert IN == 2 and IN_w == 2 and OUT == 1

    # Fast path: for small batches the kernel launch dominates the ~16*B FLOPs.
    if B < min_pallas_batch:
        return x[:, 0:1] * weight[0, 0] + x[:, 1:2] * weight[0, 1] + bias[0]

    # Free row-major views: (B, 2) -> (2B,) -> (R, 256).  No transpose, no copy
    # when B % 128 == 0; otherwise only a <=127-float pad of the flat vector.
    n_flat = 2 * B
    pad = (-n_flat) % _IN_LANES
    flat = x.reshape(n_flat)
    if pad:
        flat = jnp.pad(flat, (0, pad))
    num_rows = (n_flat + pad) // _IN_LANES
    x_slab = flat.reshape(num_rows, _IN_LANES)

    # De-interleaving weight: column j has w0 at row 2j and w1 at row 2j+1.
    w_exp = jnp.kron(jnp.eye(_OUT_LANES, dtype=x.dtype), weight.reshape(2, 1))
    b_smem = bias.reshape(OUT)

    tr = _pick_row_tile(num_rows, row_tile)
    grid = (pl.cdiv(num_rows, tr),)   # uneven last block handled by Pallas

    y_slab = pl.pallas_call(
        _linear_2to1_kernel,
        out_shape=jax.ShapeDtypeStruct((num_rows, _OUT_LANES), x.dtype),
        grid=grid,
        in_specs=[
            pl.BlockSpec((tr, _IN_LANES), lambda i: (i, 0)),         # x tile (VMEM)
            pl.BlockSpec((_IN_LANES, _OUT_LANES), lambda i: (0, 0)),  # constant weight
            pl.BlockSpec(memory_space=pltpu.MemorySpace.SMEM),        # bias scalar
        ],
        out_specs=pl.BlockSpec((tr, _OUT_LANES), lambda i: (i, 0)),
        compiler_params=pltpu.CompilerParams(
            dimension_semantics=("parallel",),      # megacore split on v7x
            vmem_limit_bytes=32 * 1024 * 1024,      # explicit; ~6 MB actually used
        ),
    )(x_slab, w_exp, b_smem)

    # (R, 128) is already batch-ordered: free reshape back to (B, 1).
    y_flat = y_slab.reshape(-1)
    if pad:
        y_flat = y_flat[:B]
    return y_flat.reshape(B, OUT)


if __name__ == "__main__":
    key = jax.random.PRNGKey(0)
    kx, kw, kb = jax.random.split(key, 3)

    IN, OUT = 2, 1
    # torch.nn.Linear(2, 1)-style init: U(-1/sqrt(in_features), +1/sqrt(in_features))
    bound = 1.0 / float(IN) ** 0.5
    weight = jax.random.uniform(kw, (OUT, IN), jnp.float32, -bound, bound)  # torch layout
    bias = jax.random.uniform(kb, (OUT,), jnp.float32, -bound, bound)

    fwd = jax.jit(rede_de_soma)

    # 1) Pallas path (batch large enough that the kernel is worth launching).
    B = 4096
    x = jax.random.normal(kx, (B, IN), jnp.float32)
    y = jax.block_until_ready(fwd(x, weight, bias))
    y_ref = x[:, 0:1] * weight[0, 0] + x[:, 1:2] * weight[0, 1] + bias[0]
    assert y.shape == (B, OUT)
    assert jnp.allclose(y, y_ref, atol=1e-5, rtol=1e-5)

    # 2) Small-batch fast path (original demo size of the module).
    x_small = jax.random.normal(kx, (8, IN), jnp.float32)
    y_small = jax.block_until_ready(fwd(x_small, weight, bias))
    y_small_ref = x_small @ weight.T + bias[None, :]
    assert y_small.shape == (8, OUT)
    assert jnp.allclose(y_small, y_small_ref, atol=1e-5, rtol=1e-5)

    print("KERNEL_OK")
</pallas_src>

<mosaic_0001>
module attributes {stable_mosaic.version = 11 : i64} {
  func.func @_linear_2to1_kernel(%arg0: i32, %arg1: memref<16x256xf32, #tpu.memory_space<vmem>>, %arg2: memref<256x128xf32, #tpu.memory_space<vmem>>, %arg3: memref<1xf32, #tpu.memory_space<smem>>, %arg4: memref<16x128xf32, #tpu.memory_space<vmem>>) attributes {dimension_semantics = [#tpu.dimension_semantics<parallel>], iteration_bounds = array<i64: 2>, scalar_prefetch = 0 : i64, scratch_operands = 0 : i64, tpu.core_type = #tpu.core_type<tc>, window_params = [{transform_indices = @transform_0, window_bounds = array<i64: 16, 256>}, {pipeline_mode = #tpu.pipeline_mode<synchronous>, transform_indices = @transform_1, window_bounds = array<i64: 256, 128>}, {transform_indices = @transform_2, window_bounds = array<i64: 1>}, {transform_indices = @transform_3, window_bounds = array<i64: 16, 128>}]} {
    %c0 = arith.constant 0 : index
    %c0_0 = arith.constant 0 : index
    %0 = vector.load %arg1[%c0, %c0_0] : memref<16x256xf32, #tpu.memory_space<vmem>>, vector<16x256xf32>
    %c0_1 = arith.constant 0 : index
    %c0_2 = arith.constant 0 : index
    %1 = vector.load %arg2[%c0_1, %c0_2] : memref<256x128xf32, #tpu.memory_space<vmem>>, vector<256x128xf32>
    %cst = arith.constant dense<0.000000e+00> : vector<16x128xf32>
    %2 = tpu.matmul %0, %1, %cst {dimension_numbers = #tpu.dot_dimension_numbers<[1], [0], [0], [1], [0, 0, 1, 1], [], []>, precision = #tpu.contract_precision<fp32>} : vector<16x256xf32>, vector<256x128xf32>, vector<16x128xf32> -> vector<16x128xf32>
    %c0_3 = arith.constant 0 : index
    %3 = memref.load %arg3[%c0_3] : memref<1xf32, #tpu.memory_space<smem>>
    %4 = vector.broadcast %3 : f32 to vector<16x128xf32>
    %5 = arith.addf %2, %4 : vector<16x128xf32>
    %c0_4 = arith.constant 0 : index
    %c0_5 = arith.constant 0 : index
    %6 = vector.load %arg4[%c0_4, %c0_5] : memref<16x128xf32, #tpu.memory_space<vmem>>, vector<16x128xf32>
    tpu.vector_store %arg4[%c0_4, %c0_5], %5 {strides = array<i32>} : memref<16x128xf32, #tpu.memory_space<vmem>>, vector<16x128xf32>,
    return
  }
  func.func @transform_0(%arg0: i32) -> (i32, i32) {
    %c0_i32 = arith.constant 0 : i32
    %c0_i32_0 = arith.constant 0 : i32
    return %arg0, %c0_i32 : i32, i32
  }
  func.func @transform_1(%arg0: i32) -> (i32, i32) {
    %c0_i32 = arith.constant 0 : i32
    %c0_i32_0 = arith.constant 0 : i32
    %c0_i32_1 = arith.constant 0 : i32
    return %c0_i32, %c0_i32_0 : i32, i32
  }
  func.func @transform_2(%arg0: i32) -> i32 {
    %c0_i32 = arith.constant 0 : i32
    %c0_i32_0 = arith.constant 0 : i32
    return %c0_i32 : i32
  }
  func.func @transform_3(%arg0: i32) -> (i32, i32) {
    %c0_i32 = arith.constant 0 : i32
    %c0_i32_0 = arith.constant 0 : i32
    return %arg0, %c0_i32 : i32, i32
  }
}

</mosaic_0001>

<bundles_post_ra>
// kernel: rede_de_soma.1
= control target key start
LH: loop header
LB: loop body
LE: loop exit
PB: predicated region body
PF: predicated region fallthrough
CT: control target
= control target key end

     0   :  { %s2433_s0 = inlined_call_operand.vmem [shape: f32[32,256], index: 0, kind: input, shape index: {}]   ;;  %s2434_s1 = inlined_call_operand.vmem [shape: f32[256,128], index: 1, kind: input, shape index: {}]   ;;  %s2435_s2 = inlined_call_operand.<no memory space> [shape: f32[1], index: 2, kind: input, shape index: {}]   ;;  %s2436_s3 = inlined_call_operand.hbm [shape: f32[32,128], index: 3, kind: output, shape index: {}]  }
   0x1   :  { %8 = sst [smem:[#allocation2]] %s2435_s2 }
   0x2   :  { %9 = vsyncpa [#allocation4], 0 }
   0x3   :  { %11 = vsyncpa [#allocation4 + $0x1], 0  ;;  %s1776_s14 = smov 0   ;;  %s1778_s15 = smov 0  }
   0x4   :  { %s1780_s16 = smov 0   ;;  %s1782_s17 = smov 0  }
   0x5 LB: > { %s1797_s2 = sadd.s32 4294967295, %s1748_s17   ;;  %s1210_s18 = sadd.s32 4294967294, %s1748_s17   ;;  %s1748_s17 = sphi %s1782_s17, %s2543_s17   ;;  %s1744_s16 = sphi %s1780_s16, %s2542_s16   ;;  %s1740_s15 = sphi %s1778_s15, %s2541_s15   ;;  %s1736_s14 = sphi %s1776_s14, %s2540_s14  }
   0x6   : > { %s1801_s19 = sadd.s32 1, %s1748_s17   ;;  %s92_s20 = sadd.s32 1, %s1744_s16 }
   0x7   : > { %s89_s21 = ssub.s32 %s1748_s17, %s1801_s19  ;;  %p102_p0 = scmp.ne.s32.totalorder %s1744_s16, %s1740_s15 }
   0x8   : > { %p90_p1 = scmp.eq.s32.totalorder %s89_s21, 0  ;;  %p103_p2 = scmp.eq.s32.totalorder %s1797_s2, 1 }
   0x9   : > { %p108_p3 = scmp.ne.s32.totalorder %s1740_s15, %s1736_s14  ;;  %p109_p4 = scmp.eq.s32.totalorder %s1210_s18, 1 }
   0xa   : > { %s1812_s22 = scalar_select %p90_p1, %s1744_s16, %s92_s20  }
   0xb   : > { %p1814_p5 = por %p103_p2, %p102_p0  ;;  %p1818_p6 = por %p109_p4, %p108_p3 }
   0xc   : > { %p1213_p7 = scmp.ge.s32.totalorder %s1748_s17, 1  ;;  %p143_p8 = scmp.lt.s32.totalorder %s1748_s17, 3 }
   0xe   : > { %p144_p9 = pnand %p1213_p7, %p143_p8 }
  0x10   : > { %147 = sbr.rel (%p144_p9) target bundleno = 384 (0x180), region = 32 }
  0x17   : > { %v196_v0 = vld [vmem:[%s2434_s1 + $0x80] sm:$0xff]  ;;  %v197_v1 = vld [vmem:[%s2434_s1 + $0x88] sm:$0xff]  ;;  %v198_v7 = vld [vmem:[%s2434_s1 + $0x90] sm:$0xff]  ;;  %s1215_s6 = sshll.u32 %s1797_s2, 1  ;;  %s212_s11 = sld [smem:[#allocation2]] }
  0x18   : > { %v180_v2 = vld [vmem:[%s2434_s1] sm:$0xff]  ;;  %v263_v3 = vand.u32 4294901760, %v196_v0  ;;  %v266_v4 = vand.u32 4294901760, %v197_v1  ;;  %v181_v5 = vld [vmem:[%s2434_s1 + $0x8] sm:$0xff]  ;;  %v199_v8 = vld [vmem:[%s2434_s1 + $0x98] sm:$0xff]  ;;  %v269_v10 = vand.u32 4294901760, %v198_v7 }
  0x19   : > { %v215_v6 = vand.u32 4294901760, %v180_v2  ;;  %v218_v9 = vand.u32 4294901760, %v181_v5  ;;  %v272_v11 = vand.u32 4294901760, %v199_v8  ;;  %v182_v12 = vld [vmem:[%s2434_s1 + $0x10] sm:$0xff]  ;;  %v183_v13 = vld [vmem:[%s2434_s1 + $0x18] sm:$0xff]  ;;  %v200_v18 = vld [vmem:[%s2434_s1 + $0xa0] sm:$0xff] }
  0x1a   : > { %v1848_v14 = vpack.c.bf16 %v266_v4, %v263_v3  ;;  %v221_v16 = vand.u32 4294901760, %v182_v12  ;;  %v224_v17 = vand.u32 4294901760, %v183_v13  ;;  %v201_v19 = vld [vmem:[%s2434_s1 + $0xa8] sm:$0xff]  ;;  %v184_v23 = vld [vmem:[%s2434_s1 + $0x20] sm:$0xff]  ;;  %v1871_v25 = vsub.f32 %v198_v7, %v269_v10  ;;  %v202_v37 = vld [vmem:[%s2434_s1 + $0xb0] sm:$0xff]  ;;  %p2017_p10 = scmp.lt.s32.totalorder %s1215_s6, 3 }
  0x1b   : > { %v1850_v15 = vsub.f32 %v180_v2, %v215_v6  ;;  %v1858_v20 = vpack.c.bf16 %v218_v9, %v215_v6  ;;  %v1860_v21 = vsub.f32 %v181_v5, %v218_v9  ;;  %v1862_v22 = vpack.c.bf16 %v272_v11, %v269_v10  ;;  %v185_v24 = vld [vmem:[%s2434_s1 + $0x28] sm:$0xff]  ;;  %v203_v42 = vld [vmem:[%s2434_s1 + $0xb8] sm:$0xff]  ;;  %v186_v55 = vld [vmem:[%s2434_s1 + $0x30] sm:$0xff]  ;;  %s165_s12 = sand.u32 1, %s1740_s15   ;;  %s1224_s21 = sshll.u32 %s1797_s2, 8 }
  0x1c   : > { %1454 = vmatprep.subr.bf16.mxu0 %v1848_v14  ;;  %v1873_v26 = vsub.f32 %v199_v8, %v272_v11  ;;  %v1875_v27 = vpack.c.bf16 %v224_v17, %v221_v16  ;;  %v1877_v28 = vsub.f32 %v182_v12, %v221_v16  ;;  %v275_v29 = vand.u32 4294901760, %v200_v18  ;;  %v187_v56 = vld [vmem:[%s2434_s1 + $0x38] sm:$0xff]  ;;  %v204_v5 = vld [vmem:[%s2434_s1 + $0xc0] sm:$0xff]  ;;  %v205_v6 = vld [vmem:[%s2434_s1 + $0xc8] sm:$0xff]  ;;  %s2545_s6 = smov (!%p2017_p10, %s1215_s6), 3  ;;  %s1214_s13 = sshll.u32 %s165_s12, 4 }
  0x1d   : > { %1456 = vmatpush3.bf16.msra.mxu0 %v1858_v20  ;;  %v278_v30 = vand.u32 4294901760, %v201_v19  ;;  %v1880_v31 = vsub.f32 %v196_v0, %v263_v3  ;;  %v1882_v32 = vsub.f32 %v197_v1, %v266_v4  ;;  %v227_v33 = vand.u32 4294901760, %v184_v23  ;;  %v188_v11 = vld [vmem:[%s2434_s1 + $0x40] sm:$0xff]  ;;  %s1223_s30 = sshll.u32 %s2545_s6, 4  ;;  %s167_s18 = scalar_lea.vmem [#allocation3], %s1214_s13 }
  0x1e   : > { %1458 = vmatprep.subr.bf16.mxu0 %v1862_v22  ;;  %v230_v34 = vand.u32 4294901760, %v185_v24  ;;  %v2454_v35 = vand.u32 4294901760, %v1850_v15  ;;  %v2453_v36 = vand.u32 4294901760, %v1860_v21  ;;  %v1890_v38 = vsub.f32 %v183_v13, %v224_v17  ;;  %s2112_s10 = scalar_lea.vmem %s2433_s0, %s1223_s30  ;;  %s1148_s20 = sshll.u32 %s167_s18, 4  ;;  %s2385_s20 = int_to_ptr.vmem [resolvable:$true] %s1148_s20 }
  0x1f   : > { %v1892_v39 = vpack.c.bf16 %v278_v30, %v275_v29  ;;  %v1894_v40 = vsub.f32 %v200_v18, %v275_v29  ;;  %v2456_v41 = vand.u32 4294901760, %v1880_v31  ;;  %v1900_v43 = vsub.f32 %v201_v19, %v278_v30  ;;  %v189_v29 = vld [vmem:[%s2434_s1 + $0x48] sm:$0xff]  ;;  %s2390_s27 = scalar_lea.hbm %s2436_s3, %s1224_s21  ;;  %s2392_s28 = scalar_lea.sflag [#allocation4], %s165_s12 }
  0x20   : > { %v2455_v44 = vand.u32 4294901760, %v1882_v32  ;;  %v1903_v45 = vpack.c.bf16 %v230_v34, %v227_v33  ;;  %v1905_v46 = vsub.f32 %v184_v23, %v227_v33  ;;  %v345_v48 = vsub.f32 %v1850_v15, %v2454_v35  ;;  %s1686_s29 = scalar_lea.vmem %s2385_s20, 256  ;;  %s1750_s2 = smov [#allocation3]  }
  0x21   : > { %1460 = vmatpush3.bf16.msra.mxu0 %v1875_v27  ;;  %v457_v47 = vsub.f32 %v1880_v31, %v2456_v41  ;;  %v352_v49 = vsub.f32 %v1860_v21, %v2453_v36  ;;  %v281_v50 = vand.u32 4294901760, %v202_v37  ;;  %v284_v52 = vand.u32 4294901760, %v203_v42  ;;  %v177_v41 = vld [vmem:[%s2112_s10 + $0x8] sm:$0xff]  ;;  %p1687_p11 = scmp.ne.s32.totalorder %s2385_s20, %s1686_s29  ;;  %s1690_s30 = sshll.u32 %s1750_s2, 4  ;;  %s1691_s30 = int_to_ptr.vmem [resolvable:$false] %s1690_s30 }
  0x22   : > { %1462 = vmatprep.subr.bf16.mxu0 %v1892_v39  ;;  %v464_v51 = vsub.f32 %v1882_v32, %v2455_v44  ;;  %v2452_v53 = vand.u32 4294901760, %v1871_v25  ;;  %v2449_v54 = vand.u32 4294901760, %v1873_v26  ;;  %v1929_v58 = vsub.f32 %v185_v24, %v230_v34  ;;  %s1692_s4 = scalar_lea.vmem %s1691_s30, 512  ;;  %p1693_p0 = scmp.lt.s32.totalorder %s2385_s20, %s1691_s30 }
  0x23   : > { %v458_v57 = vand.u32 4294901760, %v457_v47  ;;  %v346_v59 = vand.u32 4294901760, %v345_v48  ;;  %v353_v60 = vand.u32 4294901760, %v352_v49  ;;  %v1931_v62 = vpack.c.bf16 %v284_v52, %v281_v50  ;;  %p1688_p12 = pnand %p1687_p11, %p1814_p5  ;;  %p1694_p1 = scmp.lt.s32.totalorder %s1692_s4, %s1686_s29 }
  0x24   : > { %v465_v61 = vand.u32 4294901760, %v464_v51  ;;  %v1933_v63 = vsub.f32 %v202_v37, %v281_v50  ;;  %v471_v0 = vsub.f32 %v1871_v25, %v2452_v53  ;;  %v478_v2 = vsub.f32 %v1873_v26, %v2449_v54 }
  0x25   : > { %1464 = vmatpush3.bf16.msra.mxu0 %v1903_v45  ;;  %v1487_v1 = vpack.c.bf16 %v353_v60, %v346_v59  ;;  %v233_v3 = vand.u32 4294901760, %v186_v55  ;;  %v236_v4 = vand.u32 4294901760, %v187_v56  ;;  %v2448_v9 = vand.u32 4294901760, %v1877_v28  ;;  %p1689_p13 = pneg %p1688_p12  ;;  %p1695_p2 = por %p1694_p1, %p1693_p0 }
  0x26   : > { %v1485_v7 = vpack.c.bf16 %v465_v61, %v458_v57  ;;  %1466 = vmatprep.subr.bf16.mxu0 %v1931_v62  ;;  %v472_v8 = vand.u32 4294901760, %v471_v0  ;;  %v2445_v10 = vand.u32 4294901760, %v1890_v38  ;;  %v1954_v12 = vsub.f32 %v203_v42, %v284_v52  ;;  %v207_v57 = vld [vmem:[%s2434_s1 + $0xd8] sm:$0xff] }
  0x27   : > { %v479_v13 = vand.u32 4294901760, %v478_v2  ;;  %v1956_v16 = vpack.c.bf16 %v236_v4, %v233_v3  ;;  %v1958_v17 = vsub.f32 %v186_v55, %v233_v3  ;;  %v359_v18 = vsub.f32 %v1877_v28, %v2448_v9  ;;  %p1696_p3 = pnand %p1695_p2, %p1689_p13 }
  0x28   : > { %1486 = vmatprep.subr.bf16.mxu1 %v1485_v7  ;;  %v366_v19 = vsub.f32 %v1890_v38, %v2445_v10  ;;  %v287_v23 = vand.u32 4294901760, %v204_v5  ;;  %v290_v24 = vand.u32 4294901760, %v205_v6  ;;  %v2444_v33 = vand.u32 4294901760, %v1894_v40 }
  0x29   : > { %1488 = vmatpush3.bf16.msra.mxu1 %v1487_v1  ;;  %v1489_v30 = vpack.c.bf16 %v479_v13, %v472_v8  ;;  %1468 = vmatpush3.bf16.msra.mxu0 %v1956_v16  ;;  %v2442_v34 = vand.u32 4294901760, %v1900_v43  ;;  %v239_v37 = vand.u32 4294901760, %v188_v11  ;;  %v1972_v42 = vsub.f32 %v187_v56, %v236_v4  ;;  %v206_v56 = vld [vmem:[%s2434_s1 + $0xd0] sm:$0xff] }
  0x2a   : > { %v360_v47 = vand.u32 4294901760, %v359_v18  ;;  %v367_v48 = vand.u32 4294901760, %v366_v19  ;;  %v1974_v49 = vpack.c.bf16 %v290_v24, %v287_v23  ;;  %v1976_v50 = vsub.f32 %v204_v5, %v287_v23  ;;  %v190_v1 = vld [vmem:[%s2434_s1 + $0x50] sm:$0xff]  ;;  %v191_v18 = vld [vmem:[%s2434_s1 + $0x58] sm:$0xff] }
  0x2b   : > { %1490 = vmatprep.subr.bf16.mxu1 %v1489_v30  ;;  %v485_v51 = vsub.f32 %v1894_v40, %v2444_v33  ;;  %v492_v52 = vsub.f32 %v1900_v43, %v2442_v34  ;;  %v242_v55 = vand.u32 4294901760, %v189_v29  ;;  %v1991_v60 = vsub.f32 %v205_v6, %v290_v24 }
  0x2c   : > { %v1491_v59 = vpack.c.bf16 %v367_v48, %v360_v47  ;;  %1470 = vmatprep.subr.bf16.mxu0 %v1974_v49  ;;  %v2441_v61 = vand.u32 4294901760, %v1905_v46  ;;  %v2439_v0 = vand.u32 4294901760, %v1929_v58  ;;  %v2001_v5 = vsub.f32 %v188_v11, %v239_v37 }
  0x2d   : > { %v486_v2 = vand.u32 4294901760, %v485_v51  ;;  %v493_v3 = vand.u32 4294901760, %v492_v52  ;;  %v1999_v4 = vpack.c.bf16 %v242_v55, %v239_v37  ;;  %v293_v8 = vand.u32 4294901760, %v206_v56 }
  0x2e   : > { %1492 = vmatpush3.bf16.msra.mxu1 %v1491_v59  ;;  %v373_v6 = vsub.f32 %v1905_v46, %v2441_v61  ;;  %v380_v7 = vsub.f32 %v1929_v58, %v2439_v0  ;;  %v296_v13 = vand.u32 4294901760, %v207_v57  ;;  %v2438_v11 = vand.u32 4294901760, %v1933_v63 }
  0x2f   : > { %v1493_v19 = vpack.c.bf16 %v493_v3, %v486_v2  ;;  %1472 = vmatpush3.bf16.msra.mxu0 %v1999_v4  ;;  %v2437_v23 = vand.u32 4294901760, %v1954_v12  ;;  %v245_v24 = vand.u32 4294901760, %v190_v1  ;;  %v2021_v30 = vsub.f32 %v189_v29, %v242_v55  ;;  %v208_v29 = vld [vmem:[%s2434_s1 + $0xe0] sm:$0xff]  ;;  %v209_v55 = vld [vmem:[%s2434_s1 + $0xe8] sm:$0xff] }
  0x30   : > { %v374_v37 = vand.u32 4294901760, %v373_v6  ;;  %v381_v47 = vand.u32 4294901760, %v380_v7  ;;  %v2023_v48 = vpack.c.bf16 %v296_v13, %v293_v8  ;;  %v2025_v51 = vsub.f32 %v206_v56, %v293_v8  ;;  %v192_v8 = vld [vmem:[%s2434_s1 + $0x60] sm:$0xff] }
  0x31   : > { %1494 = vmatprep.subr.bf16.mxu1 %v1493_v19  ;;  %v499_v52 = vsub.f32 %v1933_v63, %v2438_v11  ;;  %v506_v59 = vsub.f32 %v1954_v12, %v2437_v23  ;;  %v248_v2 = vand.u32 4294901760, %v191_v18  ;;  %v2040_v3 = vsub.f32 %v207_v57, %v296_v13 }
  0x32   : > { %2490 = vst [vmem:[#allocation6_spill] sm:$0xff] %v2023_v48  ;;  %v1495_v56 = vpack.c.bf16 %v381_v47, %v374_v37  ;;  %1474 = vmatprep.subr.bf16.mxu0 %v2023_v48  ;;  %v2440_v6 = vand.u32 4294901760, %v1958_v17  ;;  %v2443_v7 = vand.u32 4294901760, %v1972_v42  ;;  %v2049_v0 = vsub.f32 %v190_v1, %v245_v24  ;;  %v193_v1 = vld [vmem:[%s2434_s1 + $0x68] sm:$0xff] }
  0x33   : > { %v500_v19 = vand.u32 4294901760, %v499_v52  ;;  %v507_v23 = vand.u32 4294901760, %v506_v59  ;;  %v2047_v11 = vpack.c.bf16 %v248_v2, %v245_v24  ;;  %v299_v37 = vand.u32 4294901760, %v208_v29 }
  0x34   : > { %1496 = vmatpush3.bf16.msra.mxu1 %v1495_v56  ;;  %v387_v57 = vsub.f32 %v1958_v17, %v2440_v6  ;;  %v394_v13 = vsub.f32 %v1972_v42, %v2443_v7  ;;  %v302_v47 = vand.u32 4294901760, %v209_v55  ;;  %v2447_v52 = vand.u32 4294901760, %v1976_v50 }
  0x35   : > { %2491 = vst [vmem:[#allocation7_spill] sm:$0xff] %v2047_v11  ;;  %v1497_v24 = vpack.c.bf16 %v507_v23, %v500_v19  ;;  %1476 = vmatpush3.bf16.msra.mxu0 %v2047_v11  ;;  %v2446_v59 = vand.u32 4294901760, %v1991_v60  ;;  %v251_v56 = vand.u32 4294901760, %v192_v8  ;;  %v2069_v6 = vsub.f32 %v191_v18, %v248_v2  ;;  %v210_v18 = vld [vmem:[%s2434_s1 + $0xf0] sm:$0xff]  ;;  %v211_v2 = vld [vmem:[%s2434_s1 + $0xf8] sm:$0xff] }
  0x36   : > { %v388_v61 = vand.u32 4294901760, %v387_v57  ;;  %v395_v34 = vand.u32 4294901760, %v394_v13  ;;  %v2071_v7 = vpack.c.bf16 %v302_v47, %v299_v37  ;;  %v2073_v33 = vsub.f32 %v208_v29, %v299_v37  ;;  %v179_v11 = vld [vmem:[%s2112_s10 + $0x18] sm:$0xff] }
  0x37   : > { %1498 = vmatprep.subr.bf16.mxu1 %v1497_v24  ;;  %v513_v23 = vsub.f32 %v1976_v50, %v2447_v52  ;;  %v520_v19 = vsub.f32 %v1991_v60, %v2446_v59  ;;  %v254_v10 = vand.u32 4294901760, %v193_v1  ;;  %v2089_v57 = vsub.f32 %v209_v55, %v302_v47  ;;  %v194_v24 = vld [vmem:[%s2434_s1 + $0x70] sm:$0xff] }
  0x38   : > { %2492 = vst [vmem:[#allocation8_spill] sm:$0xff] %v2071_v7  ;;  %v1499_v29 = vpack.c.bf16 %v395_v34, %v388_v61  ;;  %1478 = vmatprep.subr.bf16.mxu0 %v2071_v7  ;;  %v2451_v13 = vand.u32 4294901760, %v2001_v5  ;;  %v2450_v37 = vand.u32 4294901760, %v2021_v30  ;;  %v2098_v54 = vsub.f32 %v192_v8, %v251_v56 }
  0x39   : > { %v514_v59 = vand.u32 4294901760, %v513_v23  ;;  %v521_v52 = vand.u32 4294901760, %v520_v19  ;;  %v2096_v9 = vpack.c.bf16 %v254_v10, %v251_v56  ;;  %v305_v55 = vand.u32 4294901760, %v210_v18  ;;  %v195_v23 = vld [vmem:[%s2434_s1 + $0x78] sm:$0xff] }
  0x3a   : > { %1500 = vmatpush3.bf16.msra.mxu1 %v1499_v29  ;;  %v401_v34 = vsub.f32 %v2001_v5, %v2451_v13  ;;  %v408_v61 = vsub.f32 %v2021_v30, %v2450_v37  ;;  %v308_v47 = vand.u32 4294901760, %v211_v2  ;;  %v2459_v56 = vand.u32 4294901760, %v2025_v51 }
  0x3b   : > { %2493 = vst [vmem:[#allocation9_spill] sm:$0xff] %v2096_v9  ;;  %v1501_v8 = vpack.c.bf16 %v521_v52, %v514_v59  ;;  %1480 = vmatpush3.bf16.msra.mxu0 %v2096_v9  ;;  %v2460_v19 = vand.u32 4294901760, %v2040_v3  ;;  %v257_v29 = vand.u32 4294901760, %v194_v24  ;;  %v2117_v37 = vsub.f32 %v193_v1, %v254_v10 }
  0x3c   : > { %v402_v13 = vand.u32 4294901760, %v401_v34  ;;  %v409_v53 = vand.u32 4294901760, %v408_v61  ;;  %v2119_v36 = vpack.c.bf16 %v308_v47, %v305_v55  ;;  %v2121_v35 = vsub.f32 %v210_v18, %v305_v55  ;;  %v176_v34 = vld [vmem:[%s2112_s10] sm:$0xff] }
  0x3d   : > { %1502 = vmatprep.subr.bf16.mxu1 %v1501_v8  ;;  %v527_v52 = vsub.f32 %v2025_v51, %v2459_v56  ;;  %v534_v59 = vsub.f32 %v2040_v3, %v2460_v19  ;;  %v260_v44 = vand.u32 4294901760, %v195_v23  ;;  %v2131_v10 = vsub.f32 %v211_v2, %v308_v47 }
  0x3e   : > { %2494 = vst [vmem:[#allocation10_spill] sm:$0xff] %v2119_v36  ;;  %v1503_v9 = vpack.c.bf16 %v409_v53, %v402_v13  ;;  %1482 = vmatprep.subr.bf16.mxu0 %v2119_v36  ;;  %v2461_v1 = vand.u32 4294901760, %v2049_v0  ;;  %v2462_v18 = vand.u32 4294901760, %v2069_v6  ;;  %v2138_v56 = vsub.f32 %v194_v24, %v257_v29 }
  0x3f   : > { %v528_v61 = vand.u32 4294901760, %v527_v52  ;;  %v535_v55 = vand.u32 4294901760, %v534_v59  ;;  %v2136_v8 = vpack.c.bf16 %v260_v44, %v257_v29  ;;  %v2146_v13 = vand.u32 4294901760, %v177_v41 }
  0x40   : > { %1504 = vmatpush3.bf16.msra.mxu1 %v1503_v9  ;;  %v415_v53 = vsub.f32 %v2049_v0, %v2461_v1  ;;  %v422_v2 = vsub.f32 %v2069_v6, %v2462_v18  ;;  %v2465_v47 = vand.u32 4294901760, %v2073_v33  ;;  %v2471_v52 = vand.u32 4294901760, %v2089_v57 }
  0x41   : > { %2495 = vst [vmem:[#allocation11_spill] sm:$0xff] %v2136_v8  ;;  %2496 = vst [vmem:[#allocation12_spill] sm:$0xff] %v2146_v13  ;;  %v1505_v19 = vpack.c.bf16 %v535_v55, %v528_v61  ;;  %1484 = vmatpush3.bf16.msra.mxu0 %v2136_v8  ;;  %v1517_v9 = vpack.c.bf16 %v1882_v32, %v1880_v31  ;;  %v2153_v24 = vand.u32 4294901760, %v176_v34  ;;  %566 = vmatprep.mubr.f32.mxu1 %v2146_v13 }
  0x42   : > { %v416_v29 = vand.u32 4294901760, %v415_v53  ;;  %v423_v59 = vand.u32 4294901760, %v422_v2  ;;  %v2156_v1 = vsub.f32 %v177_v41, %v2146_v13  ;;  %v541_v18 = vsub.f32 %v2073_v33, %v2465_v47 }
  0x43   : > { %1506 = vmatprep.subr.bf16.mxu1 %v1505_v19  ;;  %v548_v61 = vsub.f32 %v2089_v57, %v2471_v52  ;;  %1518 = vmatprep.subr.bf16.mxu0 %v1517_v9  ;;  %v2166_v55 = vsub.f32 %v176_v34, %v2153_v24  ;;  %v2470_v53 = vand.u32 4294901760, %v2098_v54  ;;  %v2472_v41 = vand.u32 4294901760, %v2117_v37 }
  0x44   : > { %v2170_v2 = vsub.f32 %v195_v23, %v260_v44  ;;  %v1507_v8 = vpack.c.bf16 %v423_v59, %v416_v29  ;;  %v2473_v47 = vand.u32 4294901760, %v2156_v1  ;;  %v542_v36 = vand.u32 4294901760, %v541_v18 }
  0x45   : > { %2497 = vst [vmem:[#allocation13_spill] sm:$0xff] %v2166_v55  ;;  %v549_v13 = vand.u32 4294901760, %v548_v61  ;;  %v2478_v19 = vand.u32 4294901760, %v2166_v55  ;;  %v429_v9 = vsub.f32 %v2098_v54, %v2470_v53  ;;  %v436_v34 = vsub.f32 %v2117_v37, %v2472_v41 }
  0x46   : > { %1508 = vmatpush3.bf16.msra.mxu1 %v1507_v8  ;;  %v313_v44 = vsub.f32 %v2156_v1, %v2473_v47  ;;  %v1519_v23 = vpack.c.bf16 %v1860_v21, %v1850_v15  ;;  %v2479_v18 = vand.u32 4294901760, %v2121_v35  ;;  %v2480_v29 = vand.u32 4294901760, %v2131_v10 }
  0x47   : > { %v1509_v59 = vpack.c.bf16 %v549_v13, %v542_v36  ;;  %v319_v61 = vsub.f32 %v2166_v55, %v2478_v19  ;;  %v430_v53 = vand.u32 4294901760, %v429_v9  ;;  %v437_v52 = vand.u32 4294901760, %v436_v34 }
  0x48   : > { %v314_v41 = vand.u32 4294901760, %v313_v44  ;;  %v555_v8 = vsub.f32 %v2121_v35, %v2479_v18  ;;  %v562_v47 = vsub.f32 %v2131_v10, %v2480_v29  ;;  %v2482_v7 = vand.u32 4294901760, %v2138_v56 }
  0x49   : > { %1510 = vmatprep.subr.bf16.mxu1 %v1509_v59  ;;  %v320_v36 = vand.u32 4294901760, %v319_v61  ;;  %v1511_v13 = vpack.c.bf16 %v437_v52, %v430_v53  ;;  %v1521_v9 = vpack.c.bf16 %v1873_v26, %v1871_v25  ;;  %v2481_v34 = vand.u32 4294901760, %v2170_v2  ;;  %v178_v52 = vld [vmem:[%s2112_s10 + $0x10] sm:$0xff] }
  0x4a   : > { %315 = vmatprep.mubr.f32.mxu0 %v314_v41  ;;  %v556_v44 = vand.u32 4294901760, %v555_v8  ;;  %v563_v19 = vand.u32 4294901760, %v562_v47  ;;  %v443_v18 = vsub.f32 %v2138_v56, %v2482_v7  ;;  %v2207_v61 = vand.u32 4294901760, %v179_v11 }
  0x4b   : > { %321 = vmatmul.mubr.f32.vlgmr.msra.gmra.mrb[0].mxu0 %v320_v36  ;;  %1512 = vmatpush3.bf16.msra.mxu1 %v1511_v13  ;;  %v450_v59 = vsub.f32 %v2170_v2, %v2481_v34  ;;  %v1523_v41 = vpack.c.bf16 %v1890_v38, %v1877_v28  ;;  %v1525_v8 = vpack.c.bf16 %v1900_v43, %v1894_v40  ;;  %v2217_v13 = vand.u32 4294901760, %v178_v52 }
  0x4c   : > { %1520 = vmatpush3.bf16.msra.mxu0 %v1519_v23  ;;  %v1513_v53 = vpack.c.bf16 %v563_v19, %v556_v44  ;;  %v444_v29 = vand.u32 4294901760, %v443_v18  ;;  %v2215_v36 = vsub.f32 %v179_v11, %v2207_v61  ;;  %v1527_v23 = vpack.c.bf16 %v1929_v58, %v1905_v46 }
  0x4d   : > { %1522 = vmatprep.subr.bf16.mxu0 %v1521_v9  ;;  %v451_v47 = vand.u32 4294901760, %v450_v59  ;;  %v1529_v19 = vpack.c.bf16 %v1954_v12, %v1933_v63  ;;  %v2498_v18 = vand.u32 4294901760, %v1880_v31  ;;  %v2499_v9 = vand.u32 4294901760, %v1882_v32 }
  0x4e   : > { %1514 = vmatprep.subr.bf16.mxu1 %v1513_v53  ;;  %v327_v59 = vand.u32 4294901760, %v2215_v36  ;;  %v2229_v11 = vsub.f32 %v178_v52, %v2217_v13  ;;  %v2500_v53 = vand.u32 4294901760, %v1850_v15  ;;  %v2502_v7 = vand.u32 4294901760, %v1871_v25 }
  0x4f   : > { %v1515_v34 = vpack.c.bf16 %v451_v47, %v444_v29  ;;  %v1581_v44 = vpack.c.bf16 %v2499_v9, %v2498_v18  ;;  %v2501_v29 = vand.u32 4294901760, %v1860_v21  ;;  %v2503_v55 = vand.u32 4294901760, %v1873_v26 }
  0x50   : > { %1524 = vmatpush3.bf16.msra.mxu0 %v1523_v41  ;;  %v2504_v31 = vand.u32 4294901760, %v1877_v28  ;;  %v2505_v32 = vand.u32 4294901760, %v1890_v38  ;;  %v2506_v52 = vand.u32 4294901760, %v1894_v40  ;;  %v2507_v18 = vand.u32 4294901760, %v1900_v43 }
  0x51   : > { %v1583_v47 = vpack.c.bf16 %v2501_v29, %v2500_v53  ;;  %v1585_v48 = vpack.c.bf16 %v2503_v55, %v2502_v7  ;;  %1516 = vmatpush3.bf16.msra.mxu1 %v1515_v34  ;;  %1526 = vmatprep.subr.bf16.mxu0 %v1525_v8  ;;  %v2508_v21 = vand.u32 4294901760, %v1905_v46  ;;  %v2509_v9 = vand.u32 4294901760, %v1929_v58 }
  0x52   : > { %v1587_v41 = vpack.c.bf16 %v2505_v32, %v2504_v31  ;;  %v1589_v15 = vpack.c.bf16 %v2507_v18, %v2506_v52  ;;  %1550 = vmatprep.subr.bf16.mxu1 %v1848_v14  ;;  %v328_v26 = vsub.f32 %v2215_v36, %v327_v59  ;;  %v333_v28 = vand.u32 4294901760, %v2229_v11 }
  0x53   : > { %v2251_v25 = vpack.c.bf16 %v2509_v9, %v2508_v21  ;;  %v2510_v38 = vand.u32 4294901760, %v1933_v63  ;;  %v2511_v40 = vand.u32 4294901760, %v1954_v12  ;;  %v2512_v7 = vand.u32 4294901760, %v1958_v17  ;;  %v2520_v21 = vld [vmem:[#allocation7_spill] sm:$0xff]  ;;  %v2521_v9 = vld [vmem:[#allocation8_spill] sm:$0xff] }
  0x54   : > { %v2513_v46 = vand.u32 4294901760, %v1972_v42  ;;  %v2514_v55 = vand.u32 4294901760, %v1976_v50  ;;  %v2515_v34 = vand.u32 4294901760, %v1991_v60  ;;  %v2516_v53 = vand.u32 4294901760, %v2001_v5  ;;  %568 = vmatmul.mubr.f32.vlgmr.msra.gmra.mrb[0].mxu1 %v2153_v24  ;;  %1528 = vmatpush3.bf16.msra.mxu0 %v1527_v23 }
  0x55   : > { %v1593_v43 = vpack.c.bf16 %v2511_v40, %v2510_v38  ;;  %v2517_v29 = vand.u32 4294901760, %v2021_v30  ;;  %v1531_v12 = vpack.c.bf16 %v1972_v42, %v1958_v17  ;;  %v329_v31 = vand.u32 4294901760, %v328_v26  ;;  %1552 = vmatpush3.bf16.msra.mxu1 %v1858_v20  ;;  %1530 = vmatprep.subr.bf16.mxu0 %v1529_v19  ;;  %v2519_v19 = vld [vmem:[#allocation6_spill] sm:$0xff]  ;;  %v2522_v26 = vld [vmem:[#allocation13_spill] sm:$0xff] }
  0x56   : > { %v2266_v58 = vpack.c.bf16 %v2513_v46, %v2512_v7  ;;  %v2272_v8 = vpack.c.bf16 %v2515_v34, %v2514_v55  ;;  %v334_v32 = vsub.f32 %v2229_v11, %v333_v28  ;;  %v1533_v52 = vpack.c.bf16 %v1991_v60, %v1976_v50  ;;  %1554 = vmatprep.subr.bf16.mxu1 %v1862_v22  ;;  %v2523_v38 = vld [vmem:[#allocation9_spill] sm:$0xff]  ;;  %v2524_v40 = vld [vmem:[#allocation10_spill] sm:$0xff]  ;;  %v2525_v7 = vld [vmem:[#allocation12_spill] sm:$0xff] }
  0x57   : > { %v2278_v63 = vpack.c.bf16 %v2517_v29, %v2516_v53  ;;  %330 = vmatprep.mubr.f32.mxu0 %v329_v31  ;;  %573 = vmatprep.mubr.f32.mxu1 %v2207_v61  ;;  %v1535_v17 = vpack.c.bf16 %v2021_v30, %v2001_v5  ;;  %v1537_v42 = vpack.c.bf16 %v2040_v3, %v2025_v51  ;;  %v2518_v50 = vand.u32 4294901760, %v2156_v1  ;;  %v2526_v46 = vld [vmem:[#allocation11_spill] sm:$0xff] }
  0x58   : > { %v335_v18 = vand.u32 4294901760, %v334_v32  ;;  %1532 = vmatpush3.bf16.msra.mxu0 %v1531_v12  ;;  %575 = vmatmul.mubr.f32.gmra.mrb[2].mxu1 %v2217_v13  ;;  %v1539_v60 = vpack.c.bf16 %v2069_v6, %v2049_v0  ;;  %v1541_v5 = vpack.c.bf16 %v2089_v57, %v2073_v33  ;;  %v1543_v30 = vpack.c.bf16 %v2117_v37, %v2098_v54 }
  0x59   : > { %1556 = vmatpush3.bf16.msra.mxu1 %v1875_v27  ;;  %1534 = vmatprep.subr.bf16.mxu0 %v1533_v52  ;;  %v1547_v23 = vpack.c.bf16 %v2170_v2, %v2138_v56 }
  0x5a   : > { %1558 = vmatprep.subr.bf16.mxu1 %v1892_v39  ;;  %336 = vmatmul.mubr.f32.gmra.mrb[2].mxu0 %v335_v18 }
  0x5b   : > { %710 = vmatprep.mubr.f32.mxu0 %v2156_v1  ;;  %826 = vmatprep.mubr.f32.mxu1 %v2518_v50  ;;  %v1545_v1 = vpack.c.bf16 %v2131_v10, %v2121_v35 }
  0x5c   : > { %1536 = vmatpush3.bf16.msra.mxu0 %v1535_v17 }
  0x5d   : > { %1560 = vmatpush3.bf16.msra.mxu1 %v1903_v45  ;;  %1538 = vmatprep.subr.bf16.mxu0 %v1537_v42 }
  0x5e   : > { %1562 = vmatprep.subr.bf16.mxu1 %v1931_v62 }
  0x60   : > { %1540 = vmatpush3.bf16.msra.mxu0 %v1539_v60 }
  0x61   : > { %1564 = vmatpush3.bf16.msra.mxu1 %v1956_v16  ;;  %1542 = vmatprep.subr.bf16.mxu0 %v1541_v5 }
  0x62   : > { %1566 = vmatprep.subr.bf16.mxu1 %v1974_v49 }
  0x64   : > { %1544 = vmatpush3.bf16.msra.mxu0 %v1543_v30 }
  0x65   : > { %1568 = vmatpush3.bf16.msra.mxu1 %v1999_v4  ;;  %1546 = vmatprep.subr.bf16.mxu0 %v1545_v1 }
  0x66   : > { %1570 = vmatprep.subr.bf16.mxu1 %v2519_v19 }
  0x68   : > { %1548 = vmatpush3.bf16.msra.mxu0 %v1547_v23 }
  0x69   : > { %1572 = vmatpush3.bf16.msra.mxu1 %v2520_v21  ;;  %1582 = vmatprep.subr.bf16.mxu0 %v1581_v44  ;;  %v2527_v44 = vand.u32 4294901760, %v2522_v26 }
  0x6a   : > { %1574 = vmatprep.subr.bf16.mxu1 %v2521_v9 }
  0x6b   : > { %713 = vmatmul.mubr.f32.vlgmr.msra.gmra.mrb[4].mxu0 %v2522_v26 }
  0x6c   : > { %1584 = vmatpush3.bf16.msra.mxu0 %v1583_v47  ;;  %719 = vmatprep.mubr.f32.mxu0 %v2215_v36  ;;  %v2531_v36 = vand.u32 4294901760, %v2069_v6 }
  0x6d   : > { %1576 = vmatpush3.bf16.msra.mxu1 %v2523_v38  ;;  %1586 = vmatprep.subr.bf16.mxu0 %v1585_v48  ;;  %v2529_v48 = vand.u32 4294901760, %v2040_v3 }
  0x6e   : > { %1578 = vmatprep.subr.bf16.mxu1 %v2524_v40 }
  0x6f   : > { %722 = vmatmul.mubr.f32.gmra.mrb[6].mxu0 %v2229_v11  ;;  %v2535_v11 = vand.u32 4294901760, %v2117_v37 }
  0x70   : > { %1588 = vmatpush3.bf16.msra.mxu0 %v1587_v41  ;;  %1007 = vmatprep.mubr.f32.mxu0 %v2525_v7 }
  0x71   : > { %1580 = vmatpush3.bf16.msra.mxu1 %v2526_v46  ;;  %1590 = vmatprep.subr.bf16.mxu0 %v1589_v15 }
  0x72   : > { %1614 = vmatprep.subr.bf16.mxu1 %v1848_v14  ;;  %v2528_v14 = vand.u32 4294901760, %v2025_v51  ;;  %v2533_v51 = vand.u32 4294901760, %v2089_v57 }
  0x74   : > { %830 = vmatmul.mubr.f32.vlgmr.msra.gmra.mrb[4].mxu1 %v2527_v44  ;;  %1592 = vmatpush3.bf16.msra.mxu0 %v2251_v25 }
  0x75   : > { %1616 = vmatpush3.bf16.msra.mxu1 %v1858_v20  ;;  %837 = vmatprep.mubr.f32.mxu1 %v327_v59  ;;  %v1601_v20 = vpack.c.bf16 %v2529_v48, %v2528_v14 }
  0x76   : > { %1594 = vmatprep.subr.bf16.mxu0 %v1593_v43  ;;  %1618 = vmatprep.subr.bf16.mxu1 %v1862_v22  ;;  %v2530_v22 = vand.u32 4294901760, %v2049_v0  ;;  %v2536_v0 = vand.u32 4294901760, %v2121_v35 }
  0x78   : > { %841 = vmatmul.mubr.f32.gmra.mrb[6].mxu1 %v333_v28  ;;  %1596 = vmatpush3.bf16.msra.mxu0 %v2266_v58  ;;  %v1603_v59 = vpack.c.bf16 %v2531_v36, %v2530_v22 }
  0x79   : > { %1620 = vmatpush3.bf16.msra.mxu1 %v1875_v27  ;;  %1598 = vmatprep.subr.bf16.mxu0 %v2272_v8  ;;  %v2532_v27 = vand.u32 4294901760, %v2073_v33  ;;  %v2538_v33 = vand.u32 4294901760, %v2138_v56 }
  0x7a   : > { %1622 = vmatprep.subr.bf16.mxu1 %v1892_v39  ;;  %1118 = vmatprep.mubr.f32.mxu1 %v2525_v7  ;;  %v2534_v39 = vand.u32 4294901760, %v2098_v54 }
  0x7b   : > { %v1605_v3 = vpack.c.bf16 %v2533_v51, %v2532_v27 }
  0x7c   : > { %1600 = vmatpush3.bf16.msra.mxu0 %v2278_v63  ;;  %v1607_v47 = vpack.c.bf16 %v2535_v11, %v2534_v39 }
  0x7d   : > { %1624 = vmatpush3.bf16.msra.mxu1 %v1903_v45  ;;  %1602 = vmatprep.subr.bf16.mxu0 %v1601_v20  ;;  %v2537_v45 = vand.u32 4294901760, %v2131_v10 }
  0x7e   : > { %1626 = vmatprep.subr.bf16.mxu1 %v1931_v62  ;;  %v2539_v62 = vand.u32 4294901760, %v2170_v2 }
  0x7f   : > { %v1609_v6 = vpack.c.bf16 %v2537_v45, %v2536_v0 }
  0x80   : > { %1604 = vmatpush3.bf16.msra.mxu0 %v1603_v59  ;;  %v1611_v57 = vpack.c.bf16 %v2539_v62, %v2538_v33 }
  0x81   : > { %1628 = vmatpush3.bf16.msra.mxu1 %v1956_v16  ;;  %1606 = vmatprep.subr.bf16.mxu0 %v1605_v3 }
  0x82   : > { %1630 = vmatprep.subr.bf16.mxu1 %v1974_v49  ;;  %v213_v49 = vstv %s212_s11 }
  0x84   : > { %1608 = vmatpush3.bf16.msra.mxu0 %v1607_v47 }
  0x85   : > { %1632 = vmatpush3.bf16.msra.mxu1 %v1999_v4  ;;  %1610 = vmatprep.subr.bf16.mxu0 %v1609_v6 }
  0x86   : > { %1634 = vmatprep.subr.bf16.mxu1 %v2519_v19 }
  0x88   : > { %1612 = vmatpush3.bf16.msra.mxu0 %v1611_v57 }
  0x89   : > { %1636 = vmatpush3.bf16.msra.mxu1 %v2520_v21 }
  0x8a   : > { %1638 = vmatprep.subr.bf16.mxu1 %v2521_v9 }
  0x8b   : > { %1009 = vmatmul.mubr.f32.vlgmr.msra.gmra.mrb[8].mxu0 %v2153_v24 }
  0x8c   : > { %1014 = vmatprep.mubr.f32.mxu0 %v2207_v61 }
  0x8d   : > { %1640 = vmatpush3.bf16.msra.mxu1 %v2523_v38 }
  0x8e   : > { %1642 = vmatprep.subr.bf16.mxu1 %v2524_v40 }
  0x8f   : > { %1016 = vmatmul.mubr.f32.gmra.mrb[10].mxu0 %v2217_v13 }
  0x91   : > { %1644 = vmatpush3.bf16.msra.mxu1 %v2526_v46 }
  0x94   : > { %1120 = vmatmul.mubr.f32.vlgmr.msra.gmra.mrb[8].mxu1 %v2153_v24 }
  0x95   : > { %1125 = vmatprep.mubr.f32.mxu1 %v2207_v61 }
  0x98   : > { %1127 = vmatmul.mubr.f32.gmra.mrb[10].mxu1 %v2217_v13 }
 0x11e   : > { %v1257_v35 = vpop.f32.mrb[0].mxu0 }
 0x11f   : > { %v1258_v54 = vpop.f32.mrb[1].mxu0 }
 0x120   : > { %v1259_v16 = vadd.f32 %v1258_v54, %v1257_v35 }
 0x122   : > { %v323_v4 = vadd.f32 %v1259_v16, %v213_v49 }
 0x127   : > { %v1295_v37 = vpop.f32.mrb[0].mxu1 }
 0x128   : > { %v1296_v56 = vpop.f32.mrb[1].mxu1 }
 0x129   : > { %v1297_v10 = vadd.f32 %v1296_v56, %v1295_v37 }
 0x12b   : > { %v570_v2 = vadd.f32 %v1297_v10, %v323_v4  ;;  %v1298_v41 = vpop.f32.mrb[2].mxu1 }
 0x12c   : > { %v1299_v15 = vpop.f32.mrb[3].mxu1 }
 0x12d   : > { %v1260_v25 = vpop.f32.mrb[2].mxu0  ;;  %v1300_v28 = vadd.f32 %v1299_v15, %v1298_v41 }
 0x12e   : > { %v1261_v43 = vpop.f32.mrb[3].mxu0 }
 0x12f   : > { %v1262_v24 = vadd.f32 %v1261_v43, %v1260_v25 }
 0x131   : > { %v338_v58 = vadd.f32 %v1262_v24, %v213_v49 }
 0x133   : > { %v577_v61 = vadd.f32 %v1300_v28, %v338_v58 }
 0x13e   : > { %v1333_v55 = vpop.f32.mrb[4].mxu0 }
 0x13f   : > { %v1334_v13 = vpop.f32.mrb[5].mxu0 }
 0x140   : > { %v1335_v34 = vadd.f32 %v1334_v13, %v1333_v55 }
 0x142   : > { %v715_v8 = vadd.f32 %v1335_v34, %v570_v2  ;;  %v1336_v53 = vpop.f32.mrb[6].mxu0 }
 0x143   : > { %v1337_v29 = vpop.f32.mrb[7].mxu0 }
 0x144   : > { %v1338_v63 = vadd.f32 %v1337_v29, %v1336_v53 }
 0x146   : > { %v724_v12 = vadd.f32 %v1338_v63, %v577_v61 }
 0x147   : > { %v1371_v31 = vpop.f32.mrb[4].mxu1 }
 0x148   : > { %v1372_v32 = vpop.f32.mrb[5].mxu1 }
 0x149   : > { %v1373_v52 = vadd.f32 %v1372_v32, %v1371_v31 }
 0x14b   : > { %v832_v18 = vadd.f32 %v1373_v52, %v715_v8  ;;  %v1374_v17 = vpop.f32.mrb[6].mxu1 }
 0x14c   : > { %v1375_v42 = vpop.f32.mrb[7].mxu1 }
 0x14d   : > { %v1376_v50 = vadd.f32 %v1375_v42, %v1374_v17 }
 0x14f   : > { %v843_v60 = vadd.f32 %v1376_v50, %v724_v12 }
 0x15e   : > { %v1409_v5 = vpop.f32.mrb[8].mxu0 }
 0x15f   : > { %v1410_v30 = vpop.f32.mrb[9].mxu0 }
 0x160   : > { %v1411_v1 = vadd.f32 %v1410_v30, %v1409_v5 }
 0x162   : > { %v1011_v23 = vadd.f32 %v1411_v1, %v832_v18  ;;  %v1412_v19 = vpop.f32.mrb[10].mxu0 }
 0x163   : > { %v1413_v21 = vpop.f32.mrb[11].mxu0 }
 0x164   : > { %v1414_v9 = vadd.f32 %v1413_v21, %v1412_v19 }
 0x166   : > { %v1018_v26 = vadd.f32 %v1414_v9, %v843_v60 }
 0x167   : > { %v1447_v38 = vpop.f32.mrb[8].mxu1 }
 0x168   : > { %v1448_v40 = vpop.f32.mrb[9].mxu1 }
 0x169   : > { %v1449_v7 = vadd.f32 %v1448_v40, %v1447_v38 }
 0x16b   : > { %v1122_v46 = vadd.f32 %v1449_v7, %v1011_v23  ;;  %v1450_v44 = vpop.f32.mrb[10].mxu1 }
 0x16c   : > { %v1451_v14 = vpop.f32.mrb[11].mxu1 }
 0x16d   : > { %1132 = vst [vmem:[%s167_s18] sm:$0xff] %v1122_v46  ;;  %v1452_v48 = vadd.f32 %v1451_v14, %v1450_v44 }
 0x16f   : > { %v1129_v20 = vadd.f32 %v1452_v48, %v1018_v26 }
 0x171   : > { %1133 = vst [vmem:[%s167_s18 + $0x8] sm:$0xff] %v1129_v20 }
 0x172   : > { %1699 = shalt.err (!%p1696_p3)
}
 0x173   : > { %s1700_s5 = scalar_lea.hbm %s2390_s27, 256  ;;  %s1704_s8 = scalar_lea.hbm %s2436_s3, 512 }
 0x174   : > { %p1701_p4 = scmp.ne.s32.totalorder %s2390_s27, %s1700_s5  ;;  %p1705_p9 = scmp.lt.u32.totalorder %s2390_s27, %s2436_s3 }
 0x175   : > { %p1706_p10 = scmp.lt.u32.totalorder %s1704_s8, %s1700_s5  ;;  %p1708_p12 = scmp.lt.u32.totalorder %s1700_s5, %s2390_s27 }
 0x176   : > { %p1702_p7 = pnand %p1701_p4, %p1814_p5 }
 0x177   : > { %p1707_p11 = por %p1706_p10, %p1705_p9 }
 0x178   : > { %p1703_p8 = pneg %p1702_p7 }
 0x179   : > { %p1709_p13 = por %p1708_p12, %p1707_p11 }
 0x17b   : > { %p1710_p0 = pnand %p1709_p13, %p1703_p8 }
 0x17d   : > { %1713 = shalt.err (!%p1710_p0)
}
 0x17e   : > { %s1751_s11 = smov 128   ;;  %s1752_s12 = smov 8  }
 0x17f   : > { %1645 = dma.vmem_to_hbm [thread:$0]  (%p1814_p5), %s2385_s20, 256, %s2390_s27, %s2392_s28, %s1751_s11, %s1751_s11, %s1752_s12  }
 0x180 PF: > { %p1651_p1 = scmp.ge.s32.totalorder %s1748_s17, 2  ;;  %s1163_s13 = sand.u32 1, %s1736_s14  }
 0x181   : > { %s1164_s18 = scalar_lea.sflag [#allocation4], %s1163_s13 }
 0x182   : > { %p1648_p2 = pnand %p1651_p1, %p1818_p6 }
 0x184   : > { %1731 = dma.done.wait (!%p1648_p2), %s1164_s18, 256  }
 0x185   : > { %1733 = vsyncadd (!%p1648_p2), %s1164_s18, 4294967040  ;;  %p14_p3 = scmp.ge.s32.totalorder %s1801_s19, 4   ;;  %s2540_s14 = smov %s1740_s15 }
 0x186   : > { %s2541_s15 = smov %s1744_s16  ;;  %s2542_s16 = smov %s1812_s22 }
 0x187   : > { %s2543_s17 = smov %s1801_s19  ;;  %16 = sbr.rel (!%p14_p3) target bundleno = 5 (0x5), region = 67 }
 0x18e   :  { %1169 = vsyncpa [#allocation4], 1 }
 0x18f   :  { %1171 = vsyncpa [#allocation4 + $0x1], 1 }

</bundles_post_ra>
